<compile_context>
chip_gen: v7x
topology: tpu7x:2x2x1
jax: 0.10.0
libtpu: 0.0.40
codegen_flags: <defaults>
</compile_context>

<pallas_src>
import functools

import jax
import jax.numpy as jnp
from jax import lax
from jax.experimental import pallas as pl
from jax.experimental.pallas import tpu as pltpu

_LANE = 128
_SUBLANE = 8
_VMEM_FALLBACK = 64 * 1024 * 1024   # v7x physical VMEM per TC (most restrictive)


def _round_up(v, m):
    return (v + m - 1) // m * m


def _cdiv(a, b):
    return -(-a // b)


def _vmem_capacity_bytes():
    try:
        return int(pltpu.get_tpu_info().vmem_capacity_bytes)
    except Exception:
        return _VMEM_FALLBACK


def _working_set_bytes(block_b, block_k, nk, out_pad, w_item, x_item, o_item):
    n_w_buf = 1 if nk == 1 else 2     # resident weight vs. K-streamed (double-buffered)
    return (n_w_buf * out_pad * block_k * w_item   # weight tile(s)
            + 2 * block_b * block_k * x_item       # x tile, double-buffered
            + 2 * block_b * out_pad * o_item       # out tile, double-buffered
            + block_b * out_pad * 4                # f32 accumulator scratch
            + out_pad * 4)                         # resident f32 bias row


def _linear_kernel(x_ref, w_ref, b_ref, o_ref, acc_ref, *, lr_mul):
    k = pl.program_id(1)

    @pl.when(k == 0)
    def _():
        acc_ref[...] = jnp.zeros_like(acc_ref)

    # Native-dtype operands straight into the MXU (bf16-in / f32-accumulate);
    # NT contraction so the (out, in) PyTorch weight never needs a transpose.
    acc_ref[...] += lax.dot_general(
        x_ref[...], w_ref[...],
        dimension_numbers=(((1,), (1,)), ((), ())),
        preferred_element_type=jnp.float32,
    )

    @pl.when(k == pl.num_programs(1) - 1)
    def _():
        out = acc_ref[...] + b_ref[...].astype(jnp.float32)
        if lr_mul != 1.0:
            # x @ (w*s).T + b*s == (x @ w.T + b) * s   (exact, s scalar) —
            # O(B*out) VPU work instead of pre-scaling the whole weight.
            out = out * lr_mul
        o_ref[...] = out.astype(o_ref.dtype)


def equal_linear(x, weight, bias, lr_mul=1.0, *, max_block_b=512,
                 vmem_budget_bytes=None):
    """out = x @ (weight*lr_mul).T + bias*lr_mul.

    x: (B, in_dim), weight: (out_dim, in_dim), bias: (out_dim,).
    lr_mul=1.0 reproduces the plain nn.Linear used by Generator's to_style /
    to_noise projections.  Pass bf16 x / weight for the memory-bound regime;
    accumulation and bias stay f32 inside the kernel.
    """
    B, in_dim = x.shape
    out_dim, in_dim_w = weight.shape
    assert in_dim == in_dim_w, (in_dim, in_dim_w)
    assert bias.shape == (out_dim,), bias.shape

    if weight.dtype != x.dtype:
        # Ship the (small) weight in the activation dtype (bf16 weights halve
        # HBM traffic and keep the MXU on its native low-precision path).
        weight = weight.astype(x.dtype)

    x_item = x.dtype.itemsize
    w_item = weight.dtype.itemsize
    o_item = x.dtype.itemsize

    out_pad = _round_up(out_dim, _LANE)          # lane-dense unmasked stores

    # Pad in_dim to a lane multiple only when the blow-up is modest (latent
    # 32/48/64 -> 128); tiny in_dim (e.g. to_noise's in_dim=1) stays as a
    # full-extent single K block instead of a 128x read blow-up.
    pad_k = (in_dim % _LANE == 0) or (4 * in_dim >= _LANE)

    cap = _vmem_capacity_bytes()
    budget = vmem_budget_bytes if vmem_budget_bytes is not None else (cap * 3) // 4

    # Balanced batch tiles: cap padding waste instead of round_up(B, max_block_b).
    nblk_b = _cdiv(B, max_block_b)
    block_b = _round_up(_cdiv(B, nblk_b), _SUBLANE)

    def choose_k(block_b):
        if not pad_k:
            nk, block_k, in_pad = 1, in_dim, in_dim
            return nk, block_k, in_pad, _working_set_bytes(
                block_b, block_k, nk, out_pad, w_item, x_item, o_item)
        in_128 = _round_up(in_dim, _LANE)
        block_k = in_128
        while True:
            in_pad = _round_up(in_128, block_k)
            nk = in_pad // block_k
            ws = _working_set_bytes(block_b, block_k, nk, out_pad,
                                    w_item, x_item, o_item)
            if ws <= budget or block_k <= _LANE:
                return nk, block_k, in_pad, ws
            block_k = _round_up(block_k // 2, _LANE)

    while True:
        nk, block_k, in_pad, ws = choose_k(block_b)
        if ws <= budget or block_b <= _SUBLANE:
            break
        block_b = max(_SUBLANE, (block_b // 2 // _SUBLANE) * _SUBLANE)

    # Zero-pad weight (out + in dims) and bias; zero K columns are inert in
    # the contraction.  x is only copied when in_dim needs lane padding —
    # never for the batch axis (partial last batch tile is masked by Pallas).
    if out_pad != out_dim or in_pad != in_dim:
        weight = jnp.pad(weight, ((0, out_pad - out_dim), (0, in_pad - in_dim)))
    if in_pad != in_dim:
        x = jnp.pad(x, ((0, 0), (0, in_pad - in_dim)))
    bias2d = jnp.pad(bias.astype(jnp.float32),
                     (0, out_pad - out_dim)).reshape(1, out_pad)

    grid = (_cdiv(B, block_b), nk)

    # Megacore: shard the batch axis only when the streamed x/out bytes
    # dominate the weight bytes each core would re-fetch.
    stream_bytes = B * (in_pad * x_item + out_pad * o_item)
    weight_bytes = out_pad * in_pad * w_item
    batch_sem = "parallel" if stream_bytes >= weight_bytes else "arbitrary"

    vmem_limit = int(min(cap, max(ws + (4 << 20), 16 << 20)))

    kernel = functools.partial(_linear_kernel, lr_mul=float(lr_mul))

    out = pl.pallas_call(
        kernel,
        out_shape=jax.ShapeDtypeStruct((B, out_pad), x.dtype),
        grid_spec=pltpu.PrefetchScalarGridSpec(
            num_scalar_prefetch=0,
            grid=grid,
            in_specs=[
                # x streams per (batch, K) tile.
                pl.BlockSpec((block_b, block_k), lambda i, k: (i, k)),
                # weight: K-streamed; with nk==1 the block is constant ->
                # VMEM-resident across the whole grid.
                pl.BlockSpec((out_pad, block_k), lambda i, k: (0, k)),
                # bias: resident.
                pl.BlockSpec((1, out_pad), lambda i, k: (0, 0)),
            ],
            out_specs=pl.BlockSpec((block_b, out_pad), lambda i, k: (i, 0)),
            scratch_shapes=[pltpu.VMEM((block_b, out_pad), jnp.float32)],
        ),
        compiler_params=pltpu.CompilerParams(
            dimension_semantics=(batch_sem, "arbitrary"),
            vmem_limit_bytes=vmem_limit,
        ),
    )(x, weight, bias2d)

    return out[:, :out_dim]


def fused_style_projections(latent, weights, biases, lr_mul=1.0, **kwargs):
    """Run several nn.Linear projections that consume the SAME latent (e.g. a
    GeneratorBlock's to_style1 / to_style2 / rgb.to_style) as ONE pallas_call
    by concatenating weights/biases along out_dim: one launch + one weight DMA
    and a lane-dense wide output slab instead of N tiny calls."""
    sizes = [int(w.shape[0]) for w in weights]
    w_cat = jnp.concatenate([w.astype(latent.dtype) for w in weights], axis=0)
    b_cat = jnp.concatenate([b.astype(jnp.float32) for b in biases], axis=0)
    out = equal_linear(latent, w_cat, b_cat, lr_mul=lr_mul, **kwargs)
    outs, off = [], 0
    for s in sizes:
        outs.append(out[:, off:off + s])
        off += s
    return outs


def _reference(x, weight, bias, lr_mul=1.0):
    xf = x.astype(jnp.float32)
    wf = weight.astype(jnp.float32)
    bf = bias.astype(jnp.float32)
    return xf @ (wf * lr_mul).T + bf * lr_mul


if __name__ == "__main__":
    key = jax.random.PRNGKey(0)
    keys = jax.random.split(key, 12)

    # Case 1: Generator-style to_style projection (plain nn.Linear, lr_mul=1):
    # latent_dim=32 -> channels=64, batch=8.
    batch, latent_dim, channels = 8, 32, 64
    styles = jax.random.normal(keys[0], (batch, latent_dim), jnp.float32)
    w1 = jax.random.normal(keys[1], (channels, latent_dim), jnp.float32) * 0.1
    b1 = jax.random.normal(keys[2], (channels,), jnp.float32) * 0.1
    out1 = jax.block_until_ready(equal_linear(styles, w1, b1, lr_mul=1.0))
    ref1 = _reference(styles, w1, b1, 1.0)
    assert out1.shape == (batch, channels)
    assert jnp.allclose(out1, ref1, atol=1e-4, rtol=1e-4), float(
        jnp.max(jnp.abs(out1 - ref1)))

    # Case 2: unaligned shapes + lr_mul != 1 (EqualLinear; exercises in/out
    # lane padding and the partial last batch tile with NO batch pad copy).
    B2, in2, out2, lr2 = 37, 48, 96, 0.5
    x2 = jax.random.normal(keys[3], (B2, in2), jnp.float32)
    w2 = jax.random.normal(keys[4], (out2, in2), jnp.float32) * 0.2
    b2 = jax.random.normal(keys[5], (out2,), jnp.float32) * 0.2
    o2 = jax.block_until_ready(equal_linear(x2, w2, b2, lr_mul=lr2))
    r2 = _reference(x2, w2, b2, lr2)
    assert o2.shape == (B2, out2)
    assert jnp.allclose(o2, r2, atol=1e-4, rtol=1e-4), float(
        jnp.max(jnp.abs(o2 - r2)))

    # Case 3: bf16 activations + bf16 weights fed straight to the MXU
    # (f32 accumulate + f32 bias inside the kernel).
    B3, in3, out3 = 16, 512, 512
    x3 = jax.random.normal(keys[6], (B3, in3), jnp.float32).astype(jnp.bfloat16)
    w3 = (jax.random.normal(keys[7], (out3, in3), jnp.float32) * 0.05
          ).astype(jnp.bfloat16)
    b3 = jax.random.normal(keys[8], (out3,), jnp.float32) * 0.1
    o3 = jax.block_until_ready(equal_linear(x3, w3, b3))
    r3 = _reference(x3, w3, b3)
    assert o3.dtype == jnp.bfloat16 and o3.shape == (B3, out3)
    assert jnp.allclose(o3.astype(jnp.float32), r3, atol=5e-2, rtol=5e-2), float(
        jnp.max(jnp.abs(o3.astype(jnp.float32) - r3)))

    # Case 4: fused same-latent projections (to_style1 / to_style2 /
    # rgb.to_style of one 512-wide GeneratorBlock) -> single pallas_call.
    ws_f = [jax.random.normal(keys[9], (512, latent_dim), jnp.float32) * 0.05,
            jax.random.normal(keys[10], (512, latent_dim), jnp.float32) * 0.05,
            jax.random.normal(keys[11], (512, latent_dim), jnp.float32) * 0.05]
    bs_f = [jnp.zeros((512,), jnp.float32),
            jnp.full((512,), 0.1, jnp.float32),
            jnp.full((512,), -0.1, jnp.float32)]
    outs_f = jax.block_until_ready(fused_style_projections(styles, ws_f, bs_f))
    for of, wf, bf in zip(outs_f, ws_f, bs_f):
        rf = _reference(styles, wf, bf)
        assert jnp.allclose(of, rf, atol=1e-4, rtol=1e-4), float(
            jnp.max(jnp.abs(of - rf)))

    # Case 5: force the K-reduction grid path via a tiny VMEM budget and
    # verify the accumulator init/finalize logic.
    B5, in5, out5 = 32, 512, 512
    x5 = jax.random.normal(keys[3], (B5, in5), jnp.float32)
    w5 = jax.random.normal(keys[4], (out5, in5), jnp.float32) * 0.05
    b5 = jax.random.normal(keys[5], (out5,), jnp.float32) * 0.1
    o5 = jax.block_until_ready(
        equal_linear(x5, w5, b5, vmem_budget_bytes=256 * 1024))
    r5 = _reference(x5, w5, b5)
    assert jnp.allclose(o5, r5, atol=1e-3, rtol=1e-3), float(
        jnp.max(jnp.abs(o5 - r5)))

    print("KERNEL_OK")
</pallas_src>

<mosaic_0001>
module attributes {stable_mosaic.version = 11 : i64} {
  func.func @_linear_kernel(%arg0: i32, %arg1: i32, %arg2: memref<8x128xf32, #tpu.memory_space<vmem>>, %arg3: memref<128x128xf32, #tpu.memory_space<vmem>>, %arg4: memref<1x128xf32, #tpu.memory_space<vmem>>, %arg5: memref<8x128xf32, #tpu.memory_space<vmem>>, %arg6: memref<8x128xf32, #tpu.memory_space<vmem>>) attributes {dimension_semantics = [#tpu.dimension_semantics<arbitrary>, #tpu.dimension_semantics<arbitrary>], iteration_bounds = array<i64: 1, 1>, scalar_prefetch = 0 : i64, scratch_operands = 1 : i64, tpu.core_type = #tpu.core_type<tc>, window_params = [{transform_indices = @transform_0, window_bounds = array<i64: 8, 128>}, {transform_indices = @transform_1, window_bounds = array<i64: 128, 128>}, {pipeline_mode = #tpu.pipeline_mode<synchronous>, transform_indices = @transform_2, window_bounds = array<i64: 1, 128>}, {transform_indices = @transform_3, window_bounds = array<i64: 8, 128>}]} {
    %c0_i32 = arith.constant 0 : i32
    %0 = arith.cmpi eq, %arg1, %c0_i32 : i32
    %1 = arith.extui %0 : i1 to i32
    %c0_i32_0 = arith.constant 0 : i32
    %2 = arith.cmpi ne, %1, %c0_i32_0 : i32
    scf.if %2 {
      %cst_10 = arith.constant 0.000000e+00 : f32
      %12 = vector.broadcast %cst_10 : f32 to vector<8x128xf32>
      %c0_11 = arith.constant 0 : index
      %c0_12 = arith.constant 0 : index
      %13 = vector.load %arg6[%c0_11, %c0_12] : memref<8x128xf32, #tpu.memory_space<vmem>>, vector<8x128xf32>
      tpu.vector_store %arg6[%c0_11, %c0_12], %12 {strides = array<i32>} : memref<8x128xf32, #tpu.memory_space<vmem>>, vector<8x128xf32>,
    } else {
    }
    %c0 = arith.constant 0 : index
    %c0_1 = arith.constant 0 : index
    %3 = vector.load %arg6[%c0, %c0_1] : memref<8x128xf32, #tpu.memory_space<vmem>>, vector<8x128xf32>
    %c0_2 = arith.constant 0 : index
    %c0_3 = arith.constant 0 : index
    %4 = vector.load %arg2[%c0_2, %c0_3] : memref<8x128xf32, #tpu.memory_space<vmem>>, vector<8x128xf32>
    %c0_4 = arith.constant 0 : index
    %c0_5 = arith.constant 0 : index
    %5 = vector.load %arg3[%c0_4, %c0_5] : memref<128x128xf32, #tpu.memory_space<vmem>>, vector<128x128xf32>
    %cst = arith.constant dense<0.000000e+00> : vector<8x128xf32>
    %6 = tpu.matmul %4, %5, %cst {dimension_numbers = #tpu.dot_dimension_numbers<[1], [1], [0], [0], [0, 0, 1, 0], [], []>} : vector<8x128xf32>, vector<128x128xf32>, vector<8x128xf32> -> vector<8x128xf32>
    %7 = arith.addf %3, %6 : vector<8x128xf32>
    %c0_6 = arith.constant 0 : index
    %c0_7 = arith.constant 0 : index
    %8 = vector.load %arg6[%c0_6, %c0_7] : memref<8x128xf32, #tpu.memory_space<vmem>>, vector<8x128xf32>
    tpu.vector_store %arg6[%c0_6, %c0_7], %7 {strides = array<i32>} : memref<8x128xf32, #tpu.memory_space<vmem>>, vector<8x128xf32>,
    %c0_i32_8 = arith.constant 0 : i32
    %9 = arith.cmpi eq, %arg1, %c0_i32_8 : i32
    %10 = arith.extui %9 : i1 to i32
    %c0_i32_9 = arith.constant 0 : i32
    %11 = arith.cmpi ne, %10, %c0_i32_9 : i32
    scf.if %11 {
      %c0_10 = arith.constant 0 : index
      %c0_11 = arith.constant 0 : index
      %12 = vector.load %arg6[%c0_10, %c0_11] : memref<8x128xf32, #tpu.memory_space<vmem>>, vector<8x128xf32>
      %c0_12 = arith.constant 0 : index
      %c0_13 = arith.constant 0 : index
      %13 = vector.load %arg4[%c0_12, %c0_13] : memref<1x128xf32, #tpu.memory_space<vmem>>, vector<1x128xf32>
      %14 = vector.broadcast %13 : vector<1x128xf32> to vector<8x128xf32>
      %15 = arith.addf %12, %14 : vector<8x128xf32>
      %c0_14 = arith.constant 0 : index
      %c0_15 = arith.constant 0 : index
      %16 = vector.load %arg5[%c0_14, %c0_15] : memref<8x128xf32, #tpu.memory_space<vmem>>, vector<8x128xf32>
      tpu.vector_store %arg5[%c0_14, %c0_15], %15 {strides = array<i32>} : memref<8x128xf32, #tpu.memory_space<vmem>>, vector<8x128xf32>,
    } else {
    }
    return
  }
  func.func @transform_0(%arg0: i32, %arg1: i32) -> (i32, i32) {
    %c0_i32 = arith.constant 0 : i32
    return %arg0, %arg1 : i32, i32
  }
  func.func @transform_1(%arg0: i32, %arg1: i32) -> (i32, i32) {
    %c0_i32 = arith.constant 0 : i32
    %c0_i32_0 = arith.constant 0 : i32
    return %c0_i32, %arg1 : i32, i32
  }
  func.func @transform_2(%arg0: i32, %arg1: i32) -> (i32, i32) {
    %c0_i32 = arith.constant 0 : i32
    %c0_i32_0 = arith.constant 0 : i32
    %c0_i32_1 = arith.constant 0 : i32
    return %c0_i32, %c0_i32_0 : i32, i32
  }
  func.func @transform_3(%arg0: i32, %arg1: i32) -> (i32, i32) {
    %c0_i32 = arith.constant 0 : i32
    %c0_i32_0 = arith.constant 0 : i32
    return %arg0, %c0_i32 : i32, i32
  }
}

</mosaic_0001>

<bundles_post_ra>
// kernel: tpu_custom_call.1
= control target key start
LH: loop header
LB: loop body
LE: loop exit
PB: predicated region body
PF: predicated region fallthrough
CT: control target
= control target key end

     0   :  { %8 = vsyncpa [#allocation4], 0  ;;  %s396_s0 = inlined_call_operand.hbm [shape: f32[8,128], index: 0, kind: input, shape index: {}]   ;;  %s397_s1 = inlined_call_operand.hbm [shape: f32[128,128], index: 1, kind: input, shape index: {}]   ;;  %s398_s2 = inlined_call_operand.vmem [shape: f32[1,128], index: 2, kind: input, shape index: {}]   ;;  %s399_s3 = inlined_call_operand.hbm [shape: f32[8,128], index: 3, kind: output, shape index: {}]  }
   0x1   :  { %9 = vsyncpa [#allocation7], 0 }
   0x2   :  { %10 = vsyncpa [#allocation5], 0  ;;  %s322_s12 = smov [#allocation3]   ;;  %s323_s14 = smov [#allocation6]  }
   0x3   :  { %s17_s13 = sshll.u32 %s322_s12, 4  ;;  %s26_s15 = sshll.u32 %s323_s14, 4  ;;  %s18_s13 = int_to_ptr.vmem [resolvable:$true] %s17_s13  ;;  %s350_s15 = int_to_ptr.vmem [resolvable:$true] %s26_s15 }
   0x4   :  { %s250_s18 = scalar_lea.hbm %s396_s0, 128 }
   0x5   :  { %p251_p0 = scmp.ne.s32.totalorder %s396_s0, %s250_s18  ;;  %p254_p1 = scmp.lt.u32.totalorder %s250_s18, %s396_s0 }
   0x7   :  { %p256_p2 = pnand %p254_p1, %p251_p0 }
   0x9   :  { %259 = shalt.err (!%p256_p2)
}
   0xa   :  { %s260_s23 = scalar_lea.vmem %s18_s13, 128  ;;  %p265_p4 = scmp.lt.s32.totalorder %s18_s13, %s18_s13 }
   0xb   :  { %p261_p3 = scmp.ne.s32.totalorder %s18_s13, %s260_s23  ;;  %p266_p5 = scmp.lt.s32.totalorder %s260_s23, %s260_s23 }
   0xd   :  { %p267_p6 = por %p266_p5, %p265_p4 }
   0xf   :  { %p268_p7 = pnand %p267_p6, %p261_p3 }
  0x11   :  { %271 = shalt.err (!%p268_p7)
}
  0x12   :  { %20 = dma.hbm_to_vmem [thread:$0]  %s396_s0, 128, %s18_s13, [#allocation4]  }
  0x13   :  { %s272_s28 = scalar_lea.hbm %s397_s1, 2048 }
  0x14   :  { %p273_p8 = scmp.ne.s32.totalorder %s397_s1, %s272_s28  ;;  %p276_p9 = scmp.lt.u32.totalorder %s272_s28, %s397_s1 }
  0x16   :  { %p278_p10 = pnand %p276_p9, %p273_p8 }
  0x18   :  { %281 = shalt.err (!%p278_p10)
}
  0x19   :  { %s282_s6 = scalar_lea.vmem %s350_s15, 2048  ;;  %p287_p12 = scmp.lt.s32.totalorder %s350_s15, %s350_s15 }
  0x1a   :  { %p283_p11 = scmp.ne.s32.totalorder %s350_s15, %s282_s6  ;;  %p288_p13 = scmp.lt.s32.totalorder %s282_s6, %s282_s6 }
  0x1c   :  { %p289_p0 = por %p288_p13, %p287_p12 }
  0x1e   :  { %p290_p1 = pnand %p289_p0, %p283_p11 }
  0x20   :  { %293 = shalt.err (!%p290_p1)
}
  0x21   :  { %s324_s0 = smov 128   ;;  %s325_s7 = smov 8  }
  0x22   :  { %32 = dma.hbm_to_vmem [thread:$0]  %s397_s1, 2048, %s350_s15, [#allocation7], %s324_s0, %s324_s0, %s325_s7  }
  0x23   :  { %316 = dma.done.wait [#allocation4], 128  }
  0x24   :  { %317 = vsyncadd [#allocation4], 4294967168 }
  0x25   :  { %318 = dma.done.wait [#allocation7], 2048  }
  0x26   :  { %319 = vsyncadd [#allocation7], 4294965248  ;;  %v326_v0 = vmov 0.0|0.0   ;;  %vm327_vm0 = vmmov 0   ;;  %v328_v1 = vmov 0.0   ;;  %v48_v2 = vld [vmem:[#allocation6] sm:$0xff] }
  0x27   :  { %218 = vmatprep.subr.bf16.mxu0 %v326_v0  ;;  %215 = vmatprep.mubr.msk.f32.mxu0 %vm327_vm0, %v328_v1  ;;  %v49_v3 = vld [vmem:[#allocation6 + $0x8] sm:$0xff]  ;;  %v50_v5 = vld [vmem:[#allocation6 + $0x10] sm:$0xff]  ;;  %v51_v6 = vld [vmem:[#allocation6 + $0x18] sm:$0xff]  ;;  %s329_s11 = smov [#allocation8]  }
  0x28   :  { %v219_v4 = vpack.c.bf16 %v49_v3, %v48_v2  ;;  %v222_v7 = vpack.c.bf16 %v51_v6, %v50_v5  ;;  %v52_v8 = vld [vmem:[#allocation6 + $0x20] sm:$0xff]  ;;  %v53_v9 = vld [vmem:[#allocation6 + $0x28] sm:$0xff]  ;;  %v54_v11 = vld [vmem:[#allocation6 + $0x30] sm:$0xff]  ;;  %s155_s12 = sshll.u32 %s329_s11, 4  ;;  %s156_s12 = int_to_ptr.vmem [resolvable:$true] %s155_s12 }
  0x29   :  { %v225_v10 = vpack.c.bf16 %v53_v9, %v52_v8  ;;  %v55_v12 = vld [vmem:[#allocation6 + $0x38] sm:$0xff]  ;;  %v56_v14 = vld [vmem:[#allocation6 + $0x40] sm:$0xff]  ;;  %v57_v15 = vld [vmem:[#allocation6 + $0x48] sm:$0xff]  ;;  %s294_s13 = scalar_lea.vmem %s156_s12, 128  ;;  %p299_p3 = scmp.lt.s32.totalorder %s156_s12, %s156_s12 }
  0x2a   :  { %220 = vmatpush3.bf16.xpose.msra.mxu0 %v219_v4  ;;  %v228_v13 = vpack.c.bf16 %v55_v12, %v54_v11  ;;  %v231_v16 = vpack.c.bf16 %v57_v15, %v56_v14  ;;  %v58_v17 = vld [vmem:[#allocation6 + $0x50] sm:$0xff]  ;;  %v59_v18 = vld [vmem:[#allocation6 + $0x58] sm:$0xff]  ;;  %v60_v20 = vld [vmem:[#allocation6 + $0x60] sm:$0xff]  ;;  %p295_p2 = scmp.ne.s32.totalorder %s156_s12, %s294_s13  ;;  %p300_p4 = scmp.lt.s32.totalorder %s294_s13, %s294_s13 }
  0x2b   :  { %221 = vmatprep.subr.bf16.mxu0 %v326_v0  ;;  %v234_v19 = vpack.c.bf16 %v59_v18, %v58_v17  ;;  %v61_v21 = vld [vmem:[#allocation6 + $0x68] sm:$0xff]  ;;  %v62_v23 = vld [vmem:[#allocation6 + $0x70] sm:$0xff]  ;;  %v63_v24 = vld [vmem:[#allocation6 + $0x78] sm:$0xff] }
  0x2c   :  { %v237_v22 = vpack.c.bf16 %v61_v21, %v60_v20  ;;  %v240_v25 = vpack.c.bf16 %v63_v24, %v62_v23  ;;  %v47_v26 = vld [vmem:[#allocation3] sm:$0xff]  ;;  %p301_p5 = por %p300_p4, %p299_p3 }
  0x2d   :  { %v165_v27 = vld [vmem:[%s398_s2] ss:$0 sm:$0xff] }
  0x2e   :  { %p302_p6 = pnand %p301_p5, %p295_p2 }
  0x32   :  { %223 = vmatpush3.bf16.xpose.msra.mxu0 %v222_v7 }
  0x33   :  { %224 = vmatprep.subr.bf16.mxu0 %v326_v0 }
  0x3a   :  { %226 = vmatpush3.bf16.xpose.msra.mxu0 %v225_v10 }
  0x3b   :  { %227 = vmatprep.subr.bf16.mxu0 %v326_v0 }
  0x42   :  { %229 = vmatpush3.bf16.xpose.msra.mxu0 %v228_v13 }
  0x43   :  { %230 = vmatprep.subr.bf16.mxu0 %v326_v0 }
  0x4a   :  { %232 = vmatpush3.bf16.xpose.msra.mxu0 %v231_v16 }
  0x4b   :  { %233 = vmatprep.subr.bf16.mxu0 %v326_v0 }
  0x52   :  { %235 = vmatpush3.bf16.xpose.msra.mxu0 %v234_v19 }
  0x53   :  { %236 = vmatprep.subr.bf16.mxu0 %v326_v0 }
  0x5a   :  { %238 = vmatpush3.bf16.xpose.msra.mxu0 %v237_v22 }
  0x5b   :  { %239 = vmatprep.subr.bf16.mxu0 %v326_v0 }
  0x62   :  { %241 = vmatpush3.bf16.xpose.msra.mxu0 %v240_v25 }
  0x69   :  { %216 = vmatmul.mubr.f32.vlgmr.msra.gmra.mrb[0].mxu0 %v47_v26 }
 0x13c   :  { %v130_v28 = vpop.f32.mrb[0].mxu0 }
 0x13d   :  { %v147_v29 = vadd.f32 %v165_v27, %v130_v28  ;;  %v217_v30 = vpop.f32.mrb[1].mxu0 }
 0x13f   :  { %148 = vst [vmem:[#allocation8] sm:$0xff] %v147_v29 }
 0x140   :  { %305 = shalt.err (!%p302_p6)
}
 0x141   :  { %s306_s16 = scalar_lea.hbm %s399_s3, 128 }
 0x142   :  { %p307_p7 = scmp.ne.s32.totalorder %s399_s3, %s306_s16  ;;  %p310_p8 = scmp.lt.u32.totalorder %s306_s16, %s399_s3 }
 0x144   :  { %p312_p9 = pnand %p310_p8, %p307_p7 }
 0x146   :  { %315 = shalt.err (!%p312_p9)
}
 0x147   :  { %158 = dma.vmem_to_hbm [thread:$0]  %s156_s12, 128, %s399_s3, [#allocation5]  }
 0x148   :  { %320 = dma.done.wait [#allocation5], 128  }
 0x149   :  { %321 = vsyncadd [#allocation5], 4294967168 }
 0x14a   :  { %162 = vsyncpa [#allocation4], 1 }
 0x14b   :  { %163 = vsyncpa [#allocation7], 1 }
 0x14c   :  { %164 = vsyncpa [#allocation5], 1 }

</bundles_post_ra>
